<compile_context>
chip_gen: v5e
topology: v5e:2x2
jax: 0.10.0
libtpu: 0.0.40
codegen_flags: <defaults>
</compile_context>

<pallas_src>
import jax
import jax.numpy as jnp
from jax.experimental import pallas as pl
from jax.experimental.pallas import tpu as pltpu


def _rprelu_rowparam_kernel(x_ref, p_ref, o_ref):
    """Params vary along rows. x: (RT, LT); p: (RT, 3) = [bias0, slope, bias1]."""
    x = x_ref[...]
    p = p_ref[...]
    b0 = p[:, 0:1]
    a = p[:, 1:2]
    b1 = p[:, 2:3]
    y = x + b0                                   # LearnableBias 0
    z = jnp.where(y > 0, y, a * y)               # per-channel PReLU
    o_ref[...] = (z + b1).astype(o_ref.dtype)    # LearnableBias 1


def _rprelu_laneparam_kernel(x_ref, p_ref, o_ref):
    """Params vary along lanes. x: (RT, LT); p: (3, LT) = [bias0, slope, bias1]."""
    x = x_ref[...]
    p = p_ref[...]
    b0 = p[0:1, :]
    a = p[1:2, :]
    b1 = p[2:3, :]
    y = x + b0
    z = jnp.where(y > 0, y, a * y)
    o_ref[...] = (z + b1).astype(o_ref.dtype)


def _pick_tile(full, cap, align):
    """Full extent if it fits under cap, otherwise the largest aligned tile <= cap."""
    if full <= cap:
        return full
    return max((cap // align) * align, align)


# ~2 MiB blocks: 2x-buffered input + 2x-buffered output ~= 8 MiB, safely under
# v5e's 16 MiB default scoped-VMEM limit while still ~85% of HBM roofline.
_MAX_BLOCK_BYTES = 2 * 1024 * 1024


def rprelu_forward(x_nchw, bias0, prelu_w, bias1, *, donate_x=False):
    """x_nchw: (N, C, H, W). bias0 / prelu_w / bias1: (C,). Returns (N, C, H, W)."""
    N, C, H, W = x_nchw.shape
    HW = H * W
    dtype = x_nchw.dtype
    itemsize = jnp.dtype(dtype).itemsize
    row_align = {4: 8, 2: 16, 1: 32}.get(itemsize, 8)   # dtype-aware sublane align

    if HW % 128 == 0 or (C * HW) % 128 != 0:
        # Primary path (lane-dense when HW % 128 == 0; also the generic
        # correctness fallback for odd shapes -> masked remainder stores).
        rows, lanes = N * C, HW
        x2 = x_nchw.reshape(rows, lanes)                 # contiguous, free view
        # Packed per-row params: row r = n*C + c -> channel c. Keep x dtype.
        p = jnp.tile(jnp.stack([bias0, prelu_w, bias1], axis=-1).astype(dtype),
                     (N, 1))                             # (N*C, 3)
        kernel = _rprelu_rowparam_kernel

        def make_p_spec(row_tile, lane_tile):
            return pl.BlockSpec((row_tile, 3), lambda i, j: (i, 0))
    else:
        # Small-spatial fallback (HW < 128): fold channel+spatial into lanes so
        # the output last dim is a multiple of 128 (unmasked full-lane stores).
        rows, lanes = N, C * HW
        x2 = x_nchw.reshape(rows, lanes)                 # contiguous, free view
        # Per-lane-element params: lane l = c*HW + s -> channel c.
        p = jnp.repeat(jnp.stack([bias0, prelu_w, bias1], axis=0).astype(dtype),
                       HW, axis=1)                       # (3, C*HW), tiny
        kernel = _rprelu_laneparam_kernel

        def make_p_spec(row_tile, lane_tile):
            return pl.BlockSpec((3, lane_tile), lambda i, j: (0, j))

    # ---- tile selection -----------------------------------------------------
    lane_tile = _pick_tile(lanes, 2048, 128)
    row_cap = max((_MAX_BLOCK_BYTES // (lane_tile * itemsize))
                  // row_align * row_align, row_align)
    row_tile = _pick_tile(rows, min(row_cap, 512), row_align)

    # v7x megacore: if a >2 MiB tensor would run as a single (1,1) grid step,
    # split a parallel axis so both TensorCores get work (no effect v5e/v6e).
    total_bytes = rows * lanes * itemsize
    if (total_bytes > _MAX_BLOCK_BYTES
            and pl.cdiv(rows, row_tile) * pl.cdiv(lanes, lane_tile) < 2):
        if rows >= 2 * row_align:
            row_tile = max(((rows // 2) // row_align) * row_align, row_align)
        elif lanes >= 2 * 128:
            lane_tile = max(((lanes // 2) // 128) * 128, 128)

    grid = (pl.cdiv(rows, row_tile), pl.cdiv(lanes, lane_tile))

    out2 = pl.pallas_call(
        kernel,
        out_shape=jax.ShapeDtypeStruct((rows, lanes), dtype),
        grid_spec=pltpu.PrefetchScalarGridSpec(
            num_scalar_prefetch=0,
            grid=grid,
            in_specs=[
                pl.BlockSpec((row_tile, lane_tile), lambda i, j: (i, j)),  # x
                make_p_spec(row_tile, lane_tile),                          # packed params
            ],
            out_specs=pl.BlockSpec((row_tile, lane_tile), lambda i, j: (i, j)),
        ),
        compiler_params=pltpu.CompilerParams(
            dimension_semantics=("parallel", "parallel")),
        input_output_aliases=({0: 0} if donate_x else {}),
    )(x2, p)

    return out2.reshape(N, C, H, W)


def rprelu_reference(x, bias0, prelu_w, bias1):
    """Pure-JAX reference mirroring the PyTorch RPReLU module (NCHW)."""
    y = x + bias0[None, :, None, None]
    z = jnp.where(y > 0, y, prelu_w[None, :, None, None] * y)
    return z + bias1[None, :, None, None]


if __name__ == "__main__":
    key = jax.random.PRNGKey(0)
    k_x, k_b0, k_a, k_b1, k_x2 = jax.random.split(key, 5)

    # Per-channel parameters (module inits biases=0, slope=0.25; randomize so
    # every term is exercised).
    C = 32
    bias0 = 0.1 * jax.random.normal(k_b0, (C,), dtype=jnp.float32)
    prelu_w = 0.25 + 0.05 * jax.random.normal(k_a, (C,), dtype=jnp.float32)
    bias1 = 0.1 * jax.random.normal(k_b1, (C,), dtype=jnp.float32)

    # Primary lane-dense path: H*W = 256 (multiple of 128).
    N, H, W = 2, 16, 16
    x = jax.random.normal(k_x, (N, C, H, W), dtype=jnp.float32)
    out = jax.block_until_ready(rprelu_forward(x, bias0, prelu_w, bias1))
    ref = rprelu_reference(x, bias0, prelu_w, bias1)
    assert out.shape == (N, C, H, W), out.shape
    err = float(jnp.max(jnp.abs(out - ref)))
    assert err < 1e-5, f"primary path max abs error too large: {err}"

    # Small-spatial fallback path: H*W = 64 < 128 -> folded (N, C*H*W) view.
    N2, H2, W2 = 2, 8, 8
    x_s = jax.random.normal(k_x2, (N2, C, H2, W2), dtype=jnp.float32)
    out_s = jax.block_until_ready(rprelu_forward(x_s, bias0, prelu_w, bias1))
    ref_s = rprelu_reference(x_s, bias0, prelu_w, bias1)
    err_s = float(jnp.max(jnp.abs(out_s - ref_s)))
    assert err_s < 1e-5, f"fallback path max abs error too large: {err_s}"

    print("KERNEL_OK")
</pallas_src>

<mosaic_0001>
module attributes {stable_mosaic.version = 11 : i64} {
  func.func @_rprelu_rowparam_kernel(%arg0: i32, %arg1: i32, %arg2: memref<64x256xf32, #tpu.memory_space<vmem>>, %arg3: memref<64x3xf32, #tpu.memory_space<vmem>>, %arg4: memref<64x256xf32, #tpu.memory_space<vmem>>) attributes {dimension_semantics = [#tpu.dimension_semantics<parallel>, #tpu.dimension_semantics<parallel>], iteration_bounds = array<i64: 1, 1>, scalar_prefetch = 0 : i64, scratch_operands = 0 : i64, tpu.core_type = #tpu.core_type<tc>, window_params = [{transform_indices = @transform_0, window_bounds = array<i64: 64, 256>}, {transform_indices = @transform_1, window_bounds = array<i64: 64, 3>}, {transform_indices = @transform_2, window_bounds = array<i64: 64, 256>}]} {
    %c0 = arith.constant 0 : index
    %c0_0 = arith.constant 0 : index
    %0 = vector.load %arg2[%c0, %c0_0] : memref<64x256xf32, #tpu.memory_space<vmem>>, vector<64x256xf32>
    %c0_1 = arith.constant 0 : index
    %c0_2 = arith.constant 0 : index
    %1 = vector.load %arg3[%c0_1, %c0_2] : memref<64x3xf32, #tpu.memory_space<vmem>>, vector<64x3xf32>
    %2 = vector.extract_strided_slice %1 {offsets = [0, 0], sizes = [64, 1], strides = [1, 1]} : vector<64x3xf32> to vector<64x1xf32>
    %3 = vector.extract_strided_slice %1 {offsets = [0, 1], sizes = [64, 1], strides = [1, 1]} : vector<64x3xf32> to vector<64x1xf32>
    %4 = vector.extract_strided_slice %1 {offsets = [0, 2], sizes = [64, 1], strides = [1, 1]} : vector<64x3xf32> to vector<64x1xf32>
    %5 = vector.broadcast %2 : vector<64x1xf32> to vector<64x256xf32>
    %6 = arith.addf %0, %5 : vector<64x256xf32>
    %cst = arith.constant 0.000000e+00 : f32
    %7 = vector.broadcast %cst : f32 to vector<64x256xf32>
    %8 = arith.cmpf ogt, %6, %7 : vector<64x256xf32>
    %9 = vector.broadcast %3 : vector<64x1xf32> to vector<64x256xf32>
    %10 = arith.mulf %9, %6 : vector<64x256xf32>
    %11 = arith.select %8, %6, %10 : vector<64x256xi1>, vector<64x256xf32>
    %12 = vector.broadcast %4 : vector<64x1xf32> to vector<64x256xf32>
    %13 = arith.addf %11, %12 : vector<64x256xf32>
    %c0_3 = arith.constant 0 : index
    %c0_4 = arith.constant 0 : index
    %14 = vector.load %arg4[%c0_3, %c0_4] : memref<64x256xf32, #tpu.memory_space<vmem>>, vector<64x256xf32>
    tpu.vector_store %arg4[%c0_3, %c0_4], %13 {strides = array<i32>} : memref<64x256xf32, #tpu.memory_space<vmem>>, vector<64x256xf32>,
    return
  }
  func.func @transform_0(%arg0: i32, %arg1: i32) -> (i32, i32) {
    %c0_i32 = arith.constant 0 : i32
    return %arg0, %arg1 : i32, i32
  }
  func.func @transform_1(%arg0: i32, %arg1: i32) -> (i32, i32) {
    %c0_i32 = arith.constant 0 : i32
    %c0_i32_0 = arith.constant 0 : i32
    return %arg0, %c0_i32 : i32, i32
  }
  func.func @transform_2(%arg0: i32, %arg1: i32) -> (i32, i32) {
    %c0_i32 = arith.constant 0 : i32
    return %arg0, %arg1 : i32, i32
  }
}

</mosaic_0001>

<bundles_post_ra>
// kernel: tpu_custom_call.1
= control target key start
LH: loop header
LB: loop body
LE: loop exit
PB: predicated region body
PF: predicated region fallthrough
CT: control target
= control target key end

     0   :  { %7 = vsyncpa [#allocation3], 0  ;;  %s409_s0 = inlined_call_operand.hbm [shape: f32[64,256], index: 0, kind: input, shape index: {}]   ;;  %s410_s1 = inlined_call_operand.vmem [shape: f32[64,3], index: 1, kind: input, shape index: {}]   ;;  %s411_s2 = inlined_call_operand.hbm [shape: f32[64,256], index: 2, kind: output, shape index: {}]  }
   0x1   :  { %8 = vsyncpa [#allocation4], 0  ;;  %s13_s11 = sshll.u32 %s409_s0, 4  ;;  %s339_s12 = smov [#allocation2]   ;;  %s14_s11 = int_to_ptr.hbm [resolvable:$true] %s13_s11 }
   0x2   :  { %s15_s13 = sshll.u32 %s339_s12, 4  ;;  %s340_s14 = smov 256   ;;  %s16_s13 = int_to_ptr.vmem [resolvable:$true] %s15_s13 }
   0x3   :  { %s341_s15 = smov 16  }
   0x4   :  { %21 = dma.hbm_to_vmem [thread:$0]  %s14_s11, 2048, %s16_s13, [#allocation3], %s340_s14, %s340_s14, %s341_s15  }
   0x5   :  { %335 = dma.done.wait [#allocation3], 2048  }
   0x6   :  { %336 = vsyncadd [#allocation3], 4294965248  ;;  %v342_v0 = vmov 0   ;;  %v48_v1 = vld [vmem:[%s410_s1 + $0x20] sm:$0xff]  ;;  %v46_v2 = vld [vmem:[%s410_s1 + $0x10] sm:$0xff]  ;;  %v343_v9 = vmov 1  }
   0x7   :  { %280 = vset.pattern.permute.xlu2 %v342_v0  ;;  %279 = vset.pattern.permute.xlu1 %v342_v0  ;;  %v44_v3 = vld [vmem:[%s410_s1] sm:$0xff]  ;;  %v49_v4 = vld [vmem:[%s410_s1 + $0x28] sm:$0xff]  ;;  %v47_v5 = vld [vmem:[%s410_s1 + $0x18] sm:$0xff]  ;;  %v344_v10 = vmov 2   ;;  %s258_s6 = sshll.u32 %s411_s2, 4  ;;  %s259_s6 = int_to_ptr.hbm [resolvable:$true] %s258_s6 }
   0x8   :  { %278 = vset.pattern.permute.xlu0 %v342_v0  ;;  %74 = vperm.xlu2 %280, %v48_v1   ;;  %v45_v6 = vld [vmem:[%s410_s1 + $0x8] sm:$0xff]  ;;  %v51_v7 = vld [vmem:[%s410_s1 + $0x38] sm:$0xff]  ;;  %v50_v8 = vld [vmem:[%s410_s1 + $0x30] sm:$0xff]  ;;  %s345_s1 = smov [#allocation5]  }
   0x9   :  { %64 = vperm.xlu1 %279, %v46_v2   ;;  %54 = vperm.xlu0 %278, %v44_v3   ;;  %v28_v17 = vld [vmem:[#allocation2] sm:$0xff]  ;;  %v29_v18 = vld [vmem:[#allocation2 + $0x8] sm:$0xff]  ;;  %v34_v26 = vld [vmem:[#allocation2 + $0x30] sm:$0xff]  ;;  %s256_s3 = sshll.u32 %s345_s1, 4  ;;  %s257_s3 = int_to_ptr.vmem [resolvable:$true] %s256_s3 }
   0xa   :  { %v35_v27 = vld [vmem:[#allocation2 + $0x38] sm:$0xff]  ;;  %v38_v39 = vld [vmem:[#allocation2 + $0x50] sm:$0xff] }
   0xb   :  { %v39_v40 = vld [vmem:[#allocation2 + $0x58] sm:$0xff]  ;;  %v30_v53 = vld [vmem:[#allocation2 + $0x10] sm:$0xff] }
   0xc   :  { %v31_v54 = vld [vmem:[#allocation2 + $0x18] sm:$0xff] }
  0x10   :  { %79 = vperm.xlu2 %280, %v49_v4  }
  0x11   :  { %69 = vperm.xlu1 %279, %v47_v5   ;;  %59 = vperm.xlu0 %278, %v45_v6  }
  0x18   :  { %281 = vset.pattern.permute.xlu2 %v343_v9 }
  0x19   :  { %89 = vperm.xlu1 %279, %v51_v7   ;;  %84 = vperm.xlu0 %278, %v50_v8  }
  0x1a   :  { %125 = vperm.xlu2 %281, %v44_v3  }
  0x21   :  { %283 = vset.pattern.permute.xlu1 %v343_v9  ;;  %282 = vset.pattern.permute.xlu0 %v343_v9 }
  0x22   :  { %133 = vperm.xlu1 %283, %v46_v2   ;;  %137 = vperm.xlu2 %281, %v47_v5  }
  0x23   :  { %129 = vperm.xlu0 %282, %v45_v6  }
  0x2a   :  { %141 = vperm.xlu1 %283, %v48_v1   ;;  %145 = vperm.xlu2 %281, %v49_v4  }
  0x2b   :  { %149 = vperm.xlu0 %282, %v50_v8  }
  0x32   :  { %153 = vperm.xlu1 %283, %v51_v7   ;;  %284 = vset.pattern.permute.xlu2 %v344_v10 }
  0x33   :  { %285 = vset.pattern.permute.xlu0 %v344_v10  ;;  %189 = vperm.xlu2 %284, %v44_v3  }
  0x34   :  { %193 = vperm.xlu0 %285, %v45_v6  }
  0x3a   :  { %286 = vset.pattern.permute.xlu1 %v344_v10 }
  0x3b   :  { %197 = vperm.xlu1 %286, %v46_v2   ;;  %201 = vperm.xlu2 %284, %v47_v5   ;;  %v33_v2 = vld [vmem:[#allocation2 + $0x28] sm:$0xff] }
  0x3c   :  { %213 = vperm.xlu0 %285, %v50_v8   ;;  %v41_v5 = vld [vmem:[#allocation2 + $0x68] sm:$0xff] }
  0x43   :  { %205 = vperm.xlu1 %286, %v48_v1   ;;  %209 = vperm.xlu2 %284, %v49_v4   ;;  %v32_v1 = vld [vmem:[#allocation2 + $0x20] sm:$0xff] }
  0x44   :  { %v40_v4 = vld [vmem:[#allocation2 + $0x60] sm:$0xff] }
  0x4b   :  { %217 = vperm.xlu1 %286, %v51_v7  }
  0x62   :  { %v391_v11 = vpop.permute.xlu2 %74 }
  0x6a   :  { %v80_v12 = vpop.permute.xlu2 %79 }
  0x6b   :  { %v102_v43 = vadd.f32 %v80_v12, %v38_v39  ;;  %v103_v44 = vadd.f32 %v80_v12, %v39_v40 }
  0x6d   :  { %vm118_vm4 = vcmp.gt.f32.partialorder %v102_v43, 0.0  ;;  %vm119_vm5 = vcmp.gt.f32.partialorder %v103_v44, 0.0 }
  0x74   :  { %v126_v13 = vpop.permute.xlu2 %125 }
  0x7b   :  { %v393_v14 = vpop.permute.xlu1 %64  ;;  %v55_v15 = vpop.permute.xlu0 %54 }
  0x7c   :  { %v138_v16 = vpop.permute.xlu2 %137  ;;  %v92_v20 = vadd.f32 %v55_v15, %v28_v17  ;;  %v93_v21 = vadd.f32 %v55_v15, %v29_v18  ;;  %v96_v9 = vadd.f32 %v393_v14, %v32_v1  ;;  %v97_v10 = vadd.f32 %v393_v14, %v33_v2 }
  0x7e   :  { %v156_v24 = vmul.f32 %v126_v13, %v92_v20  ;;  %v157_v25 = vmul.f32 %v126_v13, %v93_v21  ;;  %vm108_vm0 = vcmp.gt.f32.partialorder %v92_v20, 0.0  ;;  %vm109_vm1 = vcmp.gt.f32.partialorder %v93_v21, 0.0 }
  0x7f   :  { %vm112_vm8 = vcmp.gt.f32.partialorder %v96_v9, 0.0  ;;  %vm113_vm9 = vcmp.gt.f32.partialorder %v97_v10, 0.0 }
  0x80   :  { %v172_v30 = vsel %vm108_vm0, %v92_v20, %v156_v24  ;;  %v173_v31 = vsel %vm109_vm1, %v93_v21, %v157_v25  ;;  %v36_v21 = vld [vmem:[#allocation2 + $0x40] sm:$0xff] }
  0x83   :  { %v70_v19 = vpop.permute.xlu1 %69  ;;  %v60_v22 = vpop.permute.xlu0 %59 }
  0x84   :  { %v146_v23 = vpop.permute.xlu2 %145  ;;  %v98_v32 = vadd.f32 %v70_v19, %v34_v26  ;;  %v99_v33 = vadd.f32 %v70_v19, %v35_v27  ;;  %v94_v61 = vadd.f32 %v60_v22, %v30_v53  ;;  %v95_v62 = vadd.f32 %v60_v22, %v31_v54  ;;  %v37_v22 = vld [vmem:[#allocation2 + $0x48] sm:$0xff] }
  0x85   :  { %v166_v50 = vmul.f32 %v146_v23, %v102_v43  ;;  %v167_v51 = vmul.f32 %v146_v23, %v103_v44 }
  0x86   :  { %v162_v37 = vmul.f32 %v138_v16, %v98_v32  ;;  %v163_v38 = vmul.f32 %v138_v16, %v99_v33  ;;  %vm114_vm2 = vcmp.gt.f32.partialorder %v98_v32, 0.0  ;;  %vm115_vm3 = vcmp.gt.f32.partialorder %v99_v33, 0.0 }
  0x87   :  { %v182_v57 = vsel %vm118_vm4, %v102_v43, %v166_v50  ;;  %v183_v58 = vsel %vm119_vm5, %v103_v44, %v167_v51  ;;  %vm110_vm6 = vcmp.gt.f32.partialorder %v94_v61, 0.0  ;;  %vm111_vm7 = vcmp.gt.f32.partialorder %v95_v62, 0.0 }
  0x88   :  { %v178_v46 = vsel %vm114_vm2, %v98_v32, %v162_v37  ;;  %v179_v47 = vsel %vm115_vm3, %v99_v33, %v163_v38  ;;  %v101_v32 = vadd.f32 %v391_v11, %v37_v22  ;;  %v42_v37 = vld [vmem:[#allocation2 + $0x70] sm:$0xff]  ;;  %v43_v38 = vld [vmem:[#allocation2 + $0x78] sm:$0xff] }
  0x8a   :  { %vm117_vm13 = vcmp.gt.f32.partialorder %v101_v32, 0.0 }
  0x8b   :  { %v395_v28 = vpop.permute.xlu1 %89  ;;  %v85_v29 = vpop.permute.xlu0 %84 }
  0x8c   :  { %v104_v15 = vadd.f32 %v85_v29, %v40_v4  ;;  %v105_v16 = vadd.f32 %v85_v29, %v41_v5  ;;  %v106_v44 = vadd.f32 %v395_v28, %v42_v37 }
  0x8d   :  { %v190_v34 = vpop.permute.xlu2 %189 }
  0x8e   :  { %v220_v35 = vadd.f32 %v190_v34, %v172_v30  ;;  %v221_v36 = vadd.f32 %v190_v34, %v173_v31  ;;  %vm120_vm10 = vcmp.gt.f32.partialorder %v104_v15, 0.0  ;;  %vm121_vm11 = vcmp.gt.f32.partialorder %v105_v16, 0.0 }
  0x8f   :  { %v100_v31 = vadd.f32 %v391_v11, %v36_v21  ;;  %v107_v11 = vadd.f32 %v395_v28, %v43_v38  ;;  %vm122_vm14 = vcmp.gt.f32.partialorder %v106_v44, 0.0 }
  0x90   :  { %236 = vst [vmem:[#allocation5] sm:$0xff] %v220_v35 }
  0x91   :  { %237 = vst [vmem:[#allocation5 + $0x8] sm:$0xff] %v221_v36  ;;  %vm116_vm12 = vcmp.gt.f32.partialorder %v100_v31, 0.0  ;;  %vm123_vm15 = vcmp.gt.f32.partialorder %v107_v11, 0.0 }
  0x94   :  { %v134_v41 = vpop.permute.xlu1 %133 }
  0x95   :  { %v130_v42 = vpop.permute.xlu0 %129  ;;  %v202_v45 = vpop.permute.xlu2 %201  ;;  %v160_v17 = vmul.f32 %v134_v41, %v96_v9  ;;  %v161_v18 = vmul.f32 %v134_v41, %v97_v10 }
  0x96   :  { %v226_v48 = vadd.f32 %v202_v45, %v178_v46  ;;  %v227_v49 = vadd.f32 %v202_v45, %v179_v47  ;;  %v158_v63 = vmul.f32 %v130_v42, %v94_v61  ;;  %v159_v0 = vmul.f32 %v130_v42, %v95_v62 }
  0x97   :  { %v176_v24 = vsel %vm112_vm8, %v96_v9, %v160_v17  ;;  %v177_v25 = vsel %vm113_vm9, %v97_v10, %v161_v18 }
  0x98   :  { %242 = vst [vmem:[#allocation5 + $0x30] sm:$0xff] %v226_v48  ;;  %v174_v7 = vsel %vm110_vm6, %v94_v61, %v158_v63  ;;  %v175_v8 = vsel %vm111_vm7, %v95_v62, %v159_v0 }
  0x99   :  { %243 = vst [vmem:[#allocation5 + $0x38] sm:$0xff] %v227_v49 }
  0x9c   :  { %v142_v52 = vpop.permute.xlu1 %141 }
  0x9d   :  { %v150_v55 = vpop.permute.xlu0 %149  ;;  %v210_v56 = vpop.permute.xlu2 %209  ;;  %v164_v35 = vmul.f32 %v142_v52, %v100_v31  ;;  %v165_v36 = vmul.f32 %v142_v52, %v101_v32 }
  0x9e   :  { %v230_v59 = vadd.f32 %v210_v56, %v182_v57  ;;  %v231_v60 = vadd.f32 %v210_v56, %v183_v58  ;;  %v168_v19 = vmul.f32 %v150_v55, %v104_v15  ;;  %v169_v20 = vmul.f32 %v150_v55, %v105_v16 }
  0x9f   :  { %v180_v40 = vsel %vm116_vm12, %v100_v31, %v164_v35  ;;  %v181_v41 = vsel %vm117_vm13, %v101_v32, %v165_v36 }
  0xa0   :  { %246 = vst [vmem:[#allocation5 + $0x50] sm:$0xff] %v230_v59  ;;  %v184_v30 = vsel %vm120_vm10, %v104_v15, %v168_v19  ;;  %v185_v29 = vsel %vm121_vm11, %v105_v16, %v169_v20 }
  0xa1   :  { %247 = vst [vmem:[#allocation5 + $0x58] sm:$0xff] %v231_v60 }
  0xa4   :  { %v154_v3 = vpop.permute.xlu1 %153 }
  0xa5   :  { %v170_v45 = vmul.f32 %v154_v3, %v106_v44  ;;  %v171_v46 = vmul.f32 %v154_v3, %v107_v11 }
  0xa6   :  { %v194_v6 = vpop.permute.xlu0 %193 }
  0xa7   :  { %v222_v12 = vadd.f32 %v194_v6, %v174_v7  ;;  %v223_v13 = vadd.f32 %v194_v6, %v175_v8  ;;  %v186_v48 = vsel %vm122_vm14, %v106_v44, %v170_v45  ;;  %v187_v49 = vsel %vm123_vm15, %v107_v11, %v171_v46 }
  0xa9   :  { %238 = vst [vmem:[#allocation5 + $0x10] sm:$0xff] %v222_v12 }
  0xaa   :  { %239 = vst [vmem:[#allocation5 + $0x18] sm:$0xff] %v223_v13 }
  0xad   :  { %v198_v23 = vpop.permute.xlu1 %197 }
  0xae   :  { %v224_v14 = vadd.f32 %v198_v23, %v176_v24  ;;  %v225_v26 = vadd.f32 %v198_v23, %v177_v25  ;;  %v214_v27 = vpop.permute.xlu0 %213 }
  0xaf   :  { %v232_v33 = vadd.f32 %v214_v27, %v184_v30  ;;  %v233_v34 = vadd.f32 %v214_v27, %v185_v29 }
  0xb0   :  { %240 = vst [vmem:[#allocation5 + $0x20] sm:$0xff] %v224_v14 }
  0xb1   :  { %241 = vst [vmem:[#allocation5 + $0x28] sm:$0xff] %v225_v26 }
  0xb2   :  { %248 = vst [vmem:[#allocation5 + $0x60] sm:$0xff] %v232_v33 }
  0xb3   :  { %249 = vst [vmem:[#allocation5 + $0x68] sm:$0xff] %v233_v34 }
  0xb5   :  { %v206_v39 = vpop.permute.xlu1 %205 }
  0xb6   :  { %v228_v42 = vadd.f32 %v206_v39, %v180_v40  ;;  %v229_v43 = vadd.f32 %v206_v39, %v181_v41 }
  0xb8   :  { %244 = vst [vmem:[#allocation5 + $0x40] sm:$0xff] %v228_v42 }
  0xb9   :  { %245 = vst [vmem:[#allocation5 + $0x48] sm:$0xff] %v229_v43 }
  0xbd   :  { %v218_v47 = vpop.permute.xlu1 %217 }
  0xbe   :  { %v234_v50 = vadd.f32 %v218_v47, %v186_v48  ;;  %v235_v51 = vadd.f32 %v218_v47, %v187_v49 }
  0xc0   :  { %250 = vst [vmem:[#allocation5 + $0x70] sm:$0xff] %v234_v50 }
  0xc1   :  { %251 = vst [vmem:[#allocation5 + $0x78] sm:$0xff] %v235_v51 }
  0xc2   :  { %264 = dma.vmem_to_hbm [thread:$0]  %s257_s3, 2048, %s259_s6, [#allocation4], %s340_s14, %s340_s14, %s341_s15  }
  0xc3   :  { %337 = dma.done.wait [#allocation4], 2048  }
  0xc4   :  { %338 = vsyncadd [#allocation4], 4294965248 }
  0xc5   :  { %269 = vsyncpa [#allocation3], 1 }
  0xc6   :  { %270 = vsyncpa [#allocation4], 1 }

</bundles_post_ra>
